<compile_context>
chip_gen: v6e
topology: v6e:2x2x1
jax: 0.10.0
libtpu: 0.0.40
codegen_flags: <defaults>
</compile_context>

<pallas_src>
import math

import jax
import jax.numpy as jnp
from jax.experimental import pallas as pl
from jax.experimental.pallas import tpu as pltpu


_CHUNK = 8  # timesteps per grid step; multiple of 8 -> sublane-dense output


def _gru_recurrent_kernel(gi_ref, h0_ref, whh_ref, bh_ref, out_ref, h_scr):
    """One chunk of C GRU timesteps.

    gi_ref : (C, 3*Hp) f32   precomputed input projection (+ input biases),
                             gates [r | z | n] concatenated on the lane axis.
    h0_ref : (1, Hp)    f32  initial hidden (used only at the first chunk).
    whh_ref: (Hp, 3*Hp) bf16 hidden-side weights (constant map, VMEM-resident).
    bh_ref : (1, 3*Hp)  f32  hidden-side biases  [b_hr | b_hz | b_hn].
    out_ref: (C, Hp)    f32  per-step hidden outputs for this chunk.
    h_scr  : (1, Hp)    f32  hidden carried across grid steps.
    """
    C = gi_ref.shape[0]
    Hp = h0_ref.shape[-1]

    @pl.when(pl.program_id(0) == 0)
    def _():
        h_scr[...] = h0_ref[...]

    whh = whh_ref[...]          # loaded once per chunk, reused by C matmuls
    bh = bh_ref[...]
    h = h_scr[...]              # (1, Hp) f32 carried hidden

    rows = []
    # Fully-unrolled inner chunk loop (C is a small static constant, so every
    # slice below is static -> zero-cost ref views, fully LLO-visible).
    for i in range(C):
        gi = gi_ref[pl.ds(i, 1), :]                       # (1, 3*Hp) f32
        gh = jnp.dot(h.astype(jnp.bfloat16), whh,
                     preferred_element_type=jnp.float32) + bh
        rz = jax.nn.sigmoid(gi[:, :2 * Hp] + gh[:, :2 * Hp])
        r = rz[:, :Hp]
        z = rz[:, Hp:]
        n = jnp.tanh(gi[:, 2 * Hp:] + r * gh[:, 2 * Hp:])
        h = n + z * (h - n)                               # == (1-z)*n + z*h
        rows.append(h)

    h_scr[...] = h                                        # carry to next chunk
    # One dense (C, Hp) store per chunk instead of C masked (1, Hp) stores.
    out_ref[...] = jnp.concatenate(rows, axis=0).astype(out_ref.dtype)


def encoder_rnn_forward_seq(tokens, hidden, params, chunk=_CHUNK):
    """Run T GRU steps inside one pallas_call (weights VMEM-resident).

    tokens: int32 (T,);  hidden: (1, 1, H) f32.
    Returns (outputs (T, 1, H), final hidden (1, 1, H))."""
    emb_proj = params["emb_proj"]        # (V, 3*Hp) f32
    whh = params["w_hh"]                 # (Hp, 3*Hp) bf16
    bh = params["bias_h"]                # (1, 3*Hp) f32
    H = params["hidden_size"]
    Hp = whh.shape[0]
    V = emb_proj.shape[0]
    T = int(tokens.shape[0])

    # No OOB reads: clamp before the gather (PyTorch nn.Embedding would raise
    # instead; documented semantic difference).
    tokens = jnp.clip(tokens.astype(jnp.int32), 0, V - 1)

    # Hoisted input projection for the whole sequence: trivial gather of the
    # precomputed per-vocab-row projections (done in XLA, tiny).
    gi = jnp.take(emb_proj, tokens, axis=0)               # (T, 3*Hp) f32

    C = chunk
    num_chunks = pl.cdiv(T, C)
    Tp = num_chunks * C
    if Tp != T:
        # Padded timesteps run on zero GI and are discarded in the wrapper.
        gi = jnp.pad(gi, ((0, Tp - T), (0, 0)))

    h0 = jnp.zeros((1, Hp), jnp.float32).at[:, :H].set(
        hidden.reshape(1, H).astype(jnp.float32))

    grid_spec = pltpu.PrefetchScalarGridSpec(
        num_scalar_prefetch=0,
        grid=(num_chunks,),
        in_specs=[
            # One dense (C, 3Hp) input-projection block per chunk.
            pl.BlockSpec((C, 3 * Hp), lambda c: (c, 0)),
            # Initial hidden: tiny constant block.
            pl.BlockSpec((1, Hp), lambda c: (0, 0)),
            # Hidden-side weights / biases: constant index_map => fetched once,
            # VMEM-resident across the whole sequence.
            pl.BlockSpec((Hp, 3 * Hp), lambda c: (0, 0)),
            pl.BlockSpec((1, 3 * Hp), lambda c: (0, 0)),
        ],
        out_specs=pl.BlockSpec((C, Hp), lambda c: (c, 0)),
        scratch_shapes=[pltpu.VMEM((1, Hp), jnp.float32)],   # carried hidden
    )

    outs = pl.pallas_call(
        _gru_recurrent_kernel,
        out_shape=jax.ShapeDtypeStruct((Tp, Hp), jnp.float32),
        grid_spec=grid_spec,
        compiler_params=pltpu.CompilerParams(
            dimension_semantics=("arbitrary",),   # recurrence -> sequential
            vmem_limit_bytes=32 * 1024 * 1024,
        ),
    )(gi, h0, whh, bh)

    outputs = outs[:T, :H].reshape(T, 1, H)
    # For a GRU, output == hidden, so the final hidden is just the last row.
    hidden_out = outputs[-1].reshape(1, 1, H)
    return outputs, hidden_out


def encoder_rnn_forward(token, hidden, params):
    """Single-step forward matching PyTorch EncoderRNN.forward exactly:
    token int32 (1,), hidden (1,1,H) -> (output (1,1,H), hidden (1,1,H)).

    NOTE: calling this in a per-token Python loop relaunches the kernel and
    re-DMAs W_hh every call; for encoding a known token sequence use
    encoder_rnn_forward_seq (one kernel, weights resident across all steps)."""
    outputs, hidden_out = encoder_rnn_forward_seq(token.reshape(1), hidden, params)
    return outputs.reshape(1, 1, -1), hidden_out


def _reference_forward_seq(tokens, hidden, params):
    """Pure-JAX reference mirroring the kernel numerics (bf16-rounded weights /
    embedding / hidden-side operand, f32 accumulation and gate math)."""
    raw = params["raw"]
    H = params["hidden_size"]
    emb = raw["embedding"].astype(jnp.bfloat16).astype(jnp.float32)
    w_ih = raw["w_ih"].astype(jnp.bfloat16).astype(jnp.float32)
    w_hh = raw["w_hh"].astype(jnp.bfloat16).astype(jnp.float32)
    b_ih, b_hh = raw["b_ih"], raw["b_hh"]

    h = hidden.reshape(1, H).astype(jnp.float32)
    outs = []
    for tok in tokens:
        x = emb[tok].reshape(1, H)
        h_bf = h.astype(jnp.bfloat16).astype(jnp.float32)
        gi = [x @ w_ih[g] + b_ih[g] for g in range(3)]
        gh = [h_bf @ w_hh[g] + b_hh[g] for g in range(3)]
        r = jax.nn.sigmoid(gi[0] + gh[0])
        z = jax.nn.sigmoid(gi[1] + gh[1])
        n = jnp.tanh(gi[2] + r * gh[2])
        h = (1.0 - z) * n + z * h
        outs.append(h)
    return (jnp.stack(outs).reshape(len(tokens), 1, H),
            h.reshape(1, 1, H))


def init_params(key, input_size, hidden_size):
    """PyTorch-style init (Embedding ~ N(0,1); GRU ~ U(-1/sqrt(H), 1/sqrt(H))),
    packed into the kernel layout: bf16 fused (Hp, 3*Hp) hidden weights,
    zero-padded to Hp = 128*ceil(H/128), f32 hidden biases, and a precomputed
    (V, 3*Hp) input projection table emb_proj = emb @ W_ih + b_i."""
    Hp = max(128, ((hidden_size + 127) // 128) * 128)
    bound = 1.0 / math.sqrt(hidden_size)
    k_emb, k_wih, k_whh, k_bih, k_bhh = jax.random.split(key, 5)

    emb = jax.random.normal(k_emb, (input_size, hidden_size), jnp.float32)
    # Per-gate weights already in row-vector layout (x @ W_g), gate order r,z,n.
    w_ih = jax.random.uniform(k_wih, (3, hidden_size, hidden_size),
                              jnp.float32, -bound, bound)
    w_hh = jax.random.uniform(k_whh, (3, hidden_size, hidden_size),
                              jnp.float32, -bound, bound)
    b_ih = jax.random.uniform(k_bih, (3, hidden_size), jnp.float32, -bound, bound)
    b_hh = jax.random.uniform(k_bhh, (3, hidden_size), jnp.float32, -bound, bound)

    # ---- pack for the kernel (zero-padded to Hp, gate order r,z,n) ----
    emb_p = jnp.zeros((input_size, Hp), jnp.bfloat16)
    emb_p = emb_p.at[:, :hidden_size].set(emb.astype(jnp.bfloat16))

    wih_cat = jnp.zeros((Hp, 3 * Hp), jnp.bfloat16)
    whh_cat = jnp.zeros((Hp, 3 * Hp), jnp.bfloat16)
    for g in range(3):
        wih_cat = wih_cat.at[:hidden_size, g * Hp:g * Hp + hidden_size].set(
            w_ih[g].astype(jnp.bfloat16))
        whh_cat = whh_cat.at[:hidden_size, g * Hp:g * Hp + hidden_size].set(
            w_hh[g].astype(jnp.bfloat16))

    bias_i = jnp.zeros((1, 3 * Hp), jnp.float32)
    bias_h = jnp.zeros((1, 3 * Hp), jnp.float32)
    for g in range(3):
        bias_i = bias_i.at[0, g * Hp:g * Hp + hidden_size].set(b_ih[g])
        bias_h = bias_h.at[0, g * Hp:g * Hp + hidden_size].set(b_hh[g])

    # Hoisted input projection: one (V, Hp) x (Hp, 3Hp) matmul done once
    # (bf16 operands, f32 accumulation) + input-side biases.
    emb_proj = (jnp.dot(emb_p, wih_cat, preferred_element_type=jnp.float32)
                + bias_i)                                   # (V, 3*Hp) f32

    return {
        "hidden_size": hidden_size,
        "emb_proj": emb_proj,
        "w_hh": whh_cat,
        "bias_h": bias_h,
        # raw f32 copies, only for the reference check
        "raw": {"embedding": emb, "w_ih": w_ih, "w_hh": w_hh,
                "b_ih": b_ih, "b_hh": b_hh},
    }


if __name__ == "__main__":
    INPUT_SIZE = 16     # vocab size
    HIDDEN_SIZE = 32
    SEQ_LEN = 8

    key = jax.random.PRNGKey(0)
    params = init_params(key, INPUT_SIZE, HIDDEN_SIZE)

    hidden0 = jnp.zeros((1, 1, HIDDEN_SIZE), dtype=jnp.float32)   # initHidden()

    # --- single-step forward: exact EncoderRNN.forward semantics ---
    token = jnp.array([3], dtype=jnp.int32)
    out1, hid1 = encoder_rnn_forward(token, hidden0, params)
    out1 = jax.block_until_ready(out1)
    hid1 = jax.block_until_ready(hid1)

    # --- multi-step encode: weights VMEM-resident across the sequence ---
    tokens = jax.random.randint(jax.random.PRNGKey(1), (SEQ_LEN,),
                                0, INPUT_SIZE, dtype=jnp.int32)
    outs, hid = encoder_rnn_forward_seq(tokens, hidden0, params)
    outs = jax.block_until_ready(outs)
    hid = jax.block_until_ready(hid)

    # --- correctness checks against a pure-JAX reference ---
    ref_out1, ref_hid1 = _reference_forward_seq(token, hidden0, params)
    ref_outs, ref_hid = _reference_forward_seq(tokens, hidden0, params)

    assert out1.shape == (1, 1, HIDDEN_SIZE)
    assert hid1.shape == (1, 1, HIDDEN_SIZE)
    assert outs.shape == (SEQ_LEN, 1, HIDDEN_SIZE)
    assert hid.shape == (1, 1, HIDDEN_SIZE)
    assert jnp.allclose(out1, ref_out1, atol=1e-3, rtol=1e-3)
    assert jnp.allclose(hid1, ref_hid1, atol=1e-3, rtol=1e-3)
    assert jnp.allclose(outs, ref_outs, atol=1e-3, rtol=1e-3)
    assert jnp.allclose(hid, ref_hid, atol=1e-3, rtol=1e-3)

    print("KERNEL_OK")
</pallas_src>

<mosaic_0001>
module attributes {stable_mosaic.version = 11 : i64} {
  func.func @_gru_recurrent_kernel(%arg0: i32, %arg1: memref<8x384xf32, #tpu.memory_space<vmem>>, %arg2: memref<1x128xf32, #tpu.memory_space<vmem>>, %arg3: memref<128x384xbf16, #tpu.memory_space<vmem>>, %arg4: memref<1x384xf32, #tpu.memory_space<vmem>>, %arg5: memref<8x128xf32, #tpu.memory_space<vmem>>, %arg6: memref<1x128xf32, #tpu.memory_space<vmem>>) attributes {dimension_semantics = [#tpu.dimension_semantics<arbitrary>], iteration_bounds = array<i64: 1>, scalar_prefetch = 0 : i64, scratch_operands = 1 : i64, tpu.core_type = #tpu.core_type<tc>, window_params = [{transform_indices = @transform_0, window_bounds = array<i64: 8, 384>}, {pipeline_mode = #tpu.pipeline_mode<synchronous>, transform_indices = @transform_1, window_bounds = array<i64: 1, 128>}, {pipeline_mode = #tpu.pipeline_mode<synchronous>, transform_indices = @transform_2, window_bounds = array<i64: 128, 384>}, {pipeline_mode = #tpu.pipeline_mode<synchronous>, transform_indices = @transform_3, window_bounds = array<i64: 1, 384>}, {transform_indices = @transform_4, window_bounds = array<i64: 8, 128>}]} {
    %c0_i32 = arith.constant 0 : i32
    %0 = arith.cmpi eq, %arg0, %c0_i32 : i32
    %1 = arith.extui %0 : i1 to i32
    %c0_i32_0 = arith.constant 0 : i32
    %2 = arith.cmpi ne, %1, %c0_i32_0 : i32
    scf.if %2 {
      %c0_34 = arith.constant 0 : index
      %c0_35 = arith.constant 0 : index
      %185 = vector.load %arg2[%c0_34, %c0_35] : memref<1x128xf32, #tpu.memory_space<vmem>>, vector<1x128xf32>
      %c0_36 = arith.constant 0 : index
      %c0_37 = arith.constant 0 : index
      %186 = vector.load %arg6[%c0_36, %c0_37] : memref<1x128xf32, #tpu.memory_space<vmem>>, vector<1x128xf32>
      tpu.vector_store %arg6[%c0_36, %c0_37], %185 {strides = array<i32>} : memref<1x128xf32, #tpu.memory_space<vmem>>, vector<1x128xf32>,
    } else {
    }
    %c0 = arith.constant 0 : index
    %c0_1 = arith.constant 0 : index
    %3 = vector.load %arg3[%c0, %c0_1] : memref<128x384xbf16, #tpu.memory_space<vmem>>, vector<128x384xbf16>
    %c0_2 = arith.constant 0 : index
    %c0_3 = arith.constant 0 : index
    %4 = vector.load %arg4[%c0_2, %c0_3] : memref<1x384xf32, #tpu.memory_space<vmem>>, vector<1x384xf32>
    %c0_4 = arith.constant 0 : index
    %c0_5 = arith.constant 0 : index
    %5 = vector.load %arg6[%c0_4, %c0_5] : memref<1x128xf32, #tpu.memory_space<vmem>>, vector<1x128xf32>
    %c0_6 = arith.constant 0 : index
    %c0_7 = arith.constant 0 : index
    %6 = vector.load %arg1[%c0_6, %c0_7] : memref<8x384xf32, #tpu.memory_space<vmem>>, vector<1x384xf32>
    %7 = arith.truncf %5 : vector<1x128xf32> to vector<1x128xbf16>
    %cst = arith.constant dense<0.000000e+00> : vector<1x384xf32>
    %8 = tpu.matmul %7, %3, %cst {dimension_numbers = #tpu.dot_dimension_numbers<[1], [0], [0], [1], [0, 0, 1, 1], [], []>} : vector<1x128xbf16>, vector<128x384xbf16>, vector<1x384xf32> -> vector<1x384xf32>
    %9 = arith.addf %8, %4 : vector<1x384xf32>
    %10 = vector.extract_strided_slice %6 {offsets = [0, 0], sizes = [1, 256], strides = [1, 1]} : vector<1x384xf32> to vector<1x256xf32>
    %11 = vector.extract_strided_slice %9 {offsets = [0, 0], sizes = [1, 256], strides = [1, 1]} : vector<1x384xf32> to vector<1x256xf32>
    %12 = arith.addf %10, %11 : vector<1x256xf32>
    %13 = arith.negf %12 : vector<1x256xf32>
    %14 = math.exp %13 : vector<1x256xf32>
    %cst_8 = arith.constant 1.000000e+00 : f32
    %15 = vector.broadcast %cst_8 : f32 to vector<1x256xf32>
    %16 = arith.addf %15, %14 : vector<1x256xf32>
    %17 = arith.divf %15, %16 : vector<1x256xf32>
    %18 = vector.extract_strided_slice %17 {offsets = [0, 0], sizes = [1, 128], strides = [1, 1]} : vector<1x256xf32> to vector<1x128xf32>
    %19 = vector.extract_strided_slice %17 {offsets = [0, 128], sizes = [1, 128], strides = [1, 1]} : vector<1x256xf32> to vector<1x128xf32>
    %20 = vector.extract_strided_slice %6 {offsets = [0, 256], sizes = [1, 128], strides = [1, 1]} : vector<1x384xf32> to vector<1x128xf32>
    %21 = vector.extract_strided_slice %9 {offsets = [0, 256], sizes = [1, 128], strides = [1, 1]} : vector<1x384xf32> to vector<1x128xf32>
    %22 = arith.mulf %18, %21 : vector<1x128xf32>
    %23 = arith.addf %20, %22 : vector<1x128xf32>
    %24 = math.tanh %23 : vector<1x128xf32>
    %25 = arith.subf %5, %24 : vector<1x128xf32>
    %26 = arith.mulf %19, %25 : vector<1x128xf32>
    %27 = arith.addf %24, %26 : vector<1x128xf32>
    %c1 = arith.constant 1 : index
    %c0_9 = arith.constant 0 : index
    %28 = vector.load %arg1[%c1, %c0_9] : memref<8x384xf32, #tpu.memory_space<vmem>>, vector<1x384xf32>
    %29 = arith.truncf %27 : vector<1x128xf32> to vector<1x128xbf16>
    %cst_10 = arith.constant dense<0.000000e+00> : vector<1x384xf32>
    %30 = tpu.matmul %29, %3, %cst_10 {dimension_numbers = #tpu.dot_dimension_numbers<[1], [0], [0], [1], [0, 0, 1, 1], [], []>} : vector<1x128xbf16>, vector<128x384xbf16>, vector<1x384xf32> -> vector<1x384xf32>
    %31 = arith.addf %30, %4 : vector<1x384xf32>
    %32 = vector.extract_strided_slice %28 {offsets = [0, 0], sizes = [1, 256], strides = [1, 1]} : vector<1x384xf32> to vector<1x256xf32>
    %33 = vector.extract_strided_slice %31 {offsets = [0, 0], sizes = [1, 256], strides = [1, 1]} : vector<1x384xf32> to vector<1x256xf32>
    %34 = arith.addf %32, %33 : vector<1x256xf32>
    %35 = arith.negf %34 : vector<1x256xf32>
    %36 = math.exp %35 : vector<1x256xf32>
    %cst_11 = arith.constant 1.000000e+00 : f32
    %37 = vector.broadcast %cst_11 : f32 to vector<1x256xf32>
    %38 = arith.addf %37, %36 : vector<1x256xf32>
    %39 = arith.divf %37, %38 : vector<1x256xf32>
    %40 = vector.extract_strided_slice %39 {offsets = [0, 0], sizes = [1, 128], strides = [1, 1]} : vector<1x256xf32> to vector<1x128xf32>
    %41 = vector.extract_strided_slice %39 {offsets = [0, 128], sizes = [1, 128], strides = [1, 1]} : vector<1x256xf32> to vector<1x128xf32>
    %42 = vector.extract_strided_slice %28 {offsets = [0, 256], sizes = [1, 128], strides = [1, 1]} : vector<1x384xf32> to vector<1x128xf32>
    %43 = vector.extract_strided_slice %31 {offsets = [0, 256], sizes = [1, 128], strides = [1, 1]} : vector<1x384xf32> to vector<1x128xf32>
    %44 = arith.mulf %40, %43 : vector<1x128xf32>
    %45 = arith.addf %42, %44 : vector<1x128xf32>
    %46 = math.tanh %45 : vector<1x128xf32>
    %47 = arith.subf %27, %46 : vector<1x128xf32>
    %48 = arith.mulf %41, %47 : vector<1x128xf32>
    %49 = arith.addf %46, %48 : vector<1x128xf32>
    %c2 = arith.constant 2 : index
    %c0_12 = arith.constant 0 : index
    %50 = vector.load %arg1[%c2, %c0_12] : memref<8x384xf32, #tpu.memory_space<vmem>>, vector<1x384xf32>
    %51 = arith.truncf %49 : vector<1x128xf32> to vector<1x128xbf16>
    %cst_13 = arith.constant dense<0.000000e+00> : vector<1x384xf32>
    %52 = tpu.matmul %51, %3, %cst_13 {dimension_numbers = #tpu.dot_dimension_numbers<[1], [0], [0], [1], [0, 0, 1, 1], [], []>} : vector<1x128xbf16>, vector<128x384xbf16>, vector<1x384xf32> -> vector<1x384xf32>
    %53 = arith.addf %52, %4 : vector<1x384xf32>
    %54 = vector.extract_strided_slice %50 {offsets = [0, 0], sizes = [1, 256], strides = [1, 1]} : vector<1x384xf32> to vector<1x256xf32>
    %55 = vector.extract_strided_slice %53 {offsets = [0, 0], sizes = [1, 256], strides = [1, 1]} : vector<1x384xf32> to vector<1x256xf32>
    %56 = arith.addf %54, %55 : vector<1x256xf32>
    %57 = arith.negf %56 : vector<1x256xf32>
    %58 = math.exp %57 : vector<1x256xf32>
    %cst_14 = arith.constant 1.000000e+00 : f32
    %59 = vector.broadcast %cst_14 : f32 to vector<1x256xf32>
    %60 = arith.addf %59, %58 : vector<1x256xf32>
    %61 = arith.divf %59, %60 : vector<1x256xf32>
    %62 = vector.extract_strided_slice %61 {offsets = [0, 0], sizes = [1, 128], strides = [1, 1]} : vector<1x256xf32> to vector<1x128xf32>
    %63 = vector.extract_strided_slice %61 {offsets = [0, 128], sizes = [1, 128], strides = [1, 1]} : vector<1x256xf32> to vector<1x128xf32>
    %64 = vector.extract_strided_slice %50 {offsets = [0, 256], sizes = [1, 128], strides = [1, 1]} : vector<1x384xf32> to vector<1x128xf32>
    %65 = vector.extract_strided_slice %53 {offsets = [0, 256], sizes = [1, 128], strides = [1, 1]} : vector<1x384xf32> to vector<1x128xf32>
    %66 = arith.mulf %62, %65 : vector<1x128xf32>
    %67 = arith.addf %64, %66 : vector<1x128xf32>
    %68 = math.tanh %67 : vector<1x128xf32>
    %69 = arith.subf %49, %68 : vector<1x128xf32>
    %70 = arith.mulf %63, %69 : vector<1x128xf32>
    %71 = arith.addf %68, %70 : vector<1x128xf32>
    %c3 = arith.constant 3 : index
    %c0_15 = arith.constant 0 : index
    %72 = vector.load %arg1[%c3, %c0_15] : memref<8x384xf32, #tpu.memory_space<vmem>>, vector<1x384xf32>
    %73 = arith.truncf %71 : vector<1x128xf32> to vector<1x128xbf16>
    %cst_16 = arith.constant dense<0.000000e+00> : vector<1x384xf32>
    %74 = tpu.matmul %73, %3, %cst_16 {dimension_numbers = #tpu.dot_dimension_numbers<[1], [0], [0], [1], [0, 0, 1, 1], [], []>} : vector<1x128xbf16>, vector<128x384xbf16>, vector<1x384xf32> -> vector<1x384xf32>
    %75 = arith.addf %74, %4 : vector<1x384xf32>
    %76 = vector.extract_strided_slice %72 {offsets = [0, 0], sizes = [1, 256], strides = [1, 1]} : vector<1x384xf32> to vector<1x256xf32>
    %77 = vector.extract_strided_slice %75 {offsets = [0, 0], sizes = [1, 256], strides = [1, 1]} : vector<1x384xf32> to vector<1x256xf32>
    %78 = arith.addf %76, %77 : vector<1x256xf32>
    %79 = arith.negf %78 : vector<1x256xf32>
    %80 = math.exp %79 : vector<1x256xf32>
    %cst_17 = arith.constant 1.000000e+00 : f32
    %81 = vector.broadcast %cst_17 : f32 to vector<1x256xf32>
    %82 = arith.addf %81, %80 : vector<1x256xf32>
    %83 = arith.divf %81, %82 : vector<1x256xf32>
    %84 = vector.extract_strided_slice %83 {offsets = [0, 0], sizes = [1, 128], strides = [1, 1]} : vector<1x256xf32> to vector<1x128xf32>
    %85 = vector.extract_strided_slice %83 {offsets = [0, 128], sizes = [1, 128], strides = [1, 1]} : vector<1x256xf32> to vector<1x128xf32>
    %86 = vector.extract_strided_slice %72 {offsets = [0, 256], sizes = [1, 128], strides = [1, 1]} : vector<1x384xf32> to vector<1x128xf32>
    %87 = vector.extract_strided_slice %75 {offsets = [0, 256], sizes = [1, 128], strides = [1, 1]} : vector<1x384xf32> to vector<1x128xf32>
    %88 = arith.mulf %84, %87 : vector<1x128xf32>
    %89 = arith.addf %86, %88 : vector<1x128xf32>
    %90 = math.tanh %89 : vector<1x128xf32>
    %91 = arith.subf %71, %90 : vector<1x128xf32>
    %92 = arith.mulf %85, %91 : vector<1x128xf32>
    %93 = arith.addf %90, %92 : vector<1x128xf32>
    %c4 = arith.constant 4 : index
    %c0_18 = arith.constant 0 : index
    %94 = vector.load %arg1[%c4, %c0_18] : memref<8x384xf32, #tpu.memory_space<vmem>>, vector<1x384xf32>
    %95 = arith.truncf %93 : vector<1x128xf32> to vector<1x128xbf16>
    %cst_19 = arith.constant dense<0.000000e+00> : vector<1x384xf32>
    %96 = tpu.matmul %95, %3, %cst_19 {dimension_numbers = #tpu.dot_dimension_numbers<[1], [0], [0], [1], [0, 0, 1, 1], [], []>} : vector<1x128xbf16>, vector<128x384xbf16>, vector<1x384xf32> -> vector<1x384xf32>
    %97 = arith.addf %96, %4 : vector<1x384xf32>
    %98 = vector.extract_strided_slice %94 {offsets = [0, 0], sizes = [1, 256], strides = [1, 1]} : vector<1x384xf32> to vector<1x256xf32>
    %99 = vector.extract_strided_slice %97 {offsets = [0, 0], sizes = [1, 256], strides = [1, 1]} : vector<1x384xf32> to vector<1x256xf32>
    %100 = arith.addf %98, %99 : vector<1x256xf32>
    %101 = arith.negf %100 : vector<1x256xf32>
    %102 = math.exp %101 : vector<1x256xf32>
    %cst_20 = arith.constant 1.000000e+00 : f32
    %103 = vector.broadcast %cst_20 : f32 to vector<1x256xf32>
    %104 = arith.addf %103, %102 : vector<1x256xf32>
    %105 = arith.divf %103, %104 : vector<1x256xf32>
    %106 = vector.extract_strided_slice %105 {offsets = [0, 0], sizes = [1, 128], strides = [1, 1]} : vector<1x256xf32> to vector<1x128xf32>
    %107 = vector.extract_strided_slice %105 {offsets = [0, 128], sizes = [1, 128], strides = [1, 1]} : vector<1x256xf32> to vector<1x128xf32>
    %108 = vector.extract_strided_slice %94 {offsets = [0, 256], sizes = [1, 128], strides = [1, 1]} : vector<1x384xf32> to vector<1x128xf32>
    %109 = vector.extract_strided_slice %97 {offsets = [0, 256], sizes = [1, 128], strides = [1, 1]} : vector<1x384xf32> to vector<1x128xf32>
    %110 = arith.mulf %106, %109 : vector<1x128xf32>
    %111 = arith.addf %108, %110 : vector<1x128xf32>
    %112 = math.tanh %111 : vector<1x128xf32>
    %113 = arith.subf %93, %112 : vector<1x128xf32>
    %114 = arith.mulf %107, %113 : vector<1x128xf32>
    %115 = arith.addf %112, %114 : vector<1x128xf32>
    %c5 = arith.constant 5 : index
    %c0_21 = arith.constant 0 : index
    %116 = vector.load %arg1[%c5, %c0_21] : memref<8x384xf32, #tpu.memory_space<vmem>>, vector<1x384xf32>
    %117 = arith.truncf %115 : vector<1x128xf32> to vector<1x128xbf16>
    %cst_22 = arith.constant dense<0.000000e+00> : vector<1x384xf32>
    %118 = tpu.matmul %117, %3, %cst_22 {dimension_numbers = #tpu.dot_dimension_numbers<[1], [0], [0], [1], [0, 0, 1, 1], [], []>} : vector<1x128xbf16>, vector<128x384xbf16>, vector<1x384xf32> -> vector<1x384xf32>
    %119 = arith.addf %118, %4 : vector<1x384xf32>
    %120 = vector.extract_strided_slice %116 {offsets = [0, 0], sizes = [1, 256], strides = [1, 1]} : vector<1x384xf32> to vector<1x256xf32>
    %121 = vector.extract_strided_slice %119 {offsets = [0, 0], sizes = [1, 256], strides = [1, 1]} : vector<1x384xf32> to vector<1x256xf32>
    %122 = arith.addf %120, %121 : vector<1x256xf32>
    %123 = arith.negf %122 : vector<1x256xf32>
    %124 = math.exp %123 : vector<1x256xf32>
    %cst_23 = arith.constant 1.000000e+00 : f32
    %125 = vector.broadcast %cst_23 : f32 to vector<1x256xf32>
    %126 = arith.addf %125, %124 : vector<1x256xf32>
    %127 = arith.divf %125, %126 : vector<1x256xf32>
    %128 = vector.extract_strided_slice %127 {offsets = [0, 0], sizes = [1, 128], strides = [1, 1]} : vector<1x256xf32> to vector<1x128xf32>
    %129 = vector.extract_strided_slice %127 {offsets = [0, 128], sizes = [1, 128], strides = [1, 1]} : vector<1x256xf32> to vector<1x128xf32>
    %130 = vector.extract_strided_slice %116 {offsets = [0, 256], sizes = [1, 128], strides = [1, 1]} : vector<1x384xf32> to vector<1x128xf32>
    %131 = vector.extract_strided_slice %119 {offsets = [0, 256], sizes = [1, 128], strides = [1, 1]} : vector<1x384xf32> to vector<1x128xf32>
    %132 = arith.mulf %128, %131 : vector<1x128xf32>
    %133 = arith.addf %130, %132 : vector<1x128xf32>
    %134 = math.tanh %133 : vector<1x128xf32>
    %135 = arith.subf %115, %134 : vector<1x128xf32>
    %136 = arith.mulf %129, %135 : vector<1x128xf32>
    %137 = arith.addf %134, %136 : vector<1x128xf32>
    %c6 = arith.constant 6 : index
    %c0_24 = arith.constant 0 : index
    %138 = vector.load %arg1[%c6, %c0_24] : memref<8x384xf32, #tpu.memory_space<vmem>>, vector<1x384xf32>
    %139 = arith.truncf %137 : vector<1x128xf32> to vector<1x128xbf16>
    %cst_25 = arith.constant dense<0.000000e+00> : vector<1x384xf32>
    %140 = tpu.matmul %139, %3, %cst_25 {dimension_numbers = #tpu.dot_dimension_numbers<[1], [0], [0], [1], [0, 0, 1, 1], [], []>} : vector<1x128xbf16>, vector<128x384xbf16>, vector<1x384xf32> -> vector<1x384xf32>
    %141 = arith.addf %140, %4 : vector<1x384xf32>
    %142 = vector.extract_strided_slice %138 {offsets = [0, 0], sizes = [1, 256], strides = [1, 1]} : vector<1x384xf32> to vector<1x256xf32>
    %143 = vector.extract_strided_slice %141 {offsets = [0, 0], sizes = [1, 256], strides = [1, 1]} : vector<1x384xf32> to vector<1x256xf32>
    %144 = arith.addf %142, %143 : vector<1x256xf32>
    %145 = arith.negf %144 : vector<1x256xf32>
    %146 = math.exp %145 : vector<1x256xf32>
    %cst_26 = arith.constant 1.000000e+00 : f32
    %147 = vector.broadcast %cst_26 : f32 to vector<1x256xf32>
    %148 = arith.addf %147, %146 : vector<1x256xf32>
    %149 = arith.divf %147, %148 : vector<1x256xf32>
    %150 = vector.extract_strided_slice %149 {offsets = [0, 0], sizes = [1, 128], strides = [1, 1]} : vector<1x256xf32> to vector<1x128xf32>
    %151 = vector.extract_strided_slice %149 {offsets = [0, 128], sizes = [1, 128], strides = [1, 1]} : vector<1x256xf32> to vector<1x128xf32>
    %152 = vector.extract_strided_slice %138 {offsets = [0, 256], sizes = [1, 128], strides = [1, 1]} : vector<1x384xf32> to vector<1x128xf32>
    %153 = vector.extract_strided_slice %141 {offsets = [0, 256], sizes = [1, 128], strides = [1, 1]} : vector<1x384xf32> to vector<1x128xf32>
    %154 = arith.mulf %150, %153 : vector<1x128xf32>
    %155 = arith.addf %152, %154 : vector<1x128xf32>
    %156 = math.tanh %155 : vector<1x128xf32>
    %157 = arith.subf %137, %156 : vector<1x128xf32>
    %158 = arith.mulf %151, %157 : vector<1x128xf32>
    %159 = arith.addf %156, %158 : vector<1x128xf32>
    %c7 = arith.constant 7 : index
    %c0_27 = arith.constant 0 : index
    %160 = vector.load %arg1[%c7, %c0_27] : memref<8x384xf32, #tpu.memory_space<vmem>>, vector<1x384xf32>
    %161 = arith.truncf %159 : vector<1x128xf32> to vector<1x128xbf16>
    %cst_28 = arith.constant dense<0.000000e+00> : vector<1x384xf32>
    %162 = tpu.matmul %161, %3, %cst_28 {dimension_numbers = #tpu.dot_dimension_numbers<[1], [0], [0], [1], [0, 0, 1, 1], [], []>} : vector<1x128xbf16>, vector<128x384xbf16>, vector<1x384xf32> -> vector<1x384xf32>
    %163 = arith.addf %162, %4 : vector<1x384xf32>
    %164 = vector.extract_strided_slice %160 {offsets = [0, 0], sizes = [1, 256], strides = [1, 1]} : vector<1x384xf32> to vector<1x256xf32>
    %165 = vector.extract_strided_slice %163 {offsets = [0, 0], sizes = [1, 256], strides = [1, 1]} : vector<1x384xf32> to vector<1x256xf32>
    %166 = arith.addf %164, %165 : vector<1x256xf32>
    %167 = arith.negf %166 : vector<1x256xf32>
    %168 = math.exp %167 : vector<1x256xf32>
    %cst_29 = arith.constant 1.000000e+00 : f32
    %169 = vector.broadcast %cst_29 : f32 to vector<1x256xf32>
    %170 = arith.addf %169, %168 : vector<1x256xf32>
    %171 = arith.divf %169, %170 : vector<1x256xf32>
    %172 = vector.extract_strided_slice %171 {offsets = [0, 0], sizes = [1, 128], strides = [1, 1]} : vector<1x256xf32> to vector<1x128xf32>
    %173 = vector.extract_strided_slice %171 {offsets = [0, 128], sizes = [1, 128], strides = [1, 1]} : vector<1x256xf32> to vector<1x128xf32>
    %174 = vector.extract_strided_slice %160 {offsets = [0, 256], sizes = [1, 128], strides = [1, 1]} : vector<1x384xf32> to vector<1x128xf32>
    %175 = vector.extract_strided_slice %163 {offsets = [0, 256], sizes = [1, 128], strides = [1, 1]} : vector<1x384xf32> to vector<1x128xf32>
    %176 = arith.mulf %172, %175 : vector<1x128xf32>
    %177 = arith.addf %174, %176 : vector<1x128xf32>
    %178 = math.tanh %177 : vector<1x128xf32>
    %179 = arith.subf %159, %178 : vector<1x128xf32>
    %180 = arith.mulf %173, %179 : vector<1x128xf32>
    %181 = arith.addf %178, %180 : vector<1x128xf32>
    %c0_30 = arith.constant 0 : index
    %c0_31 = arith.constant 0 : index
    %182 = vector.load %arg6[%c0_30, %c0_31] : memref<1x128xf32, #tpu.memory_space<vmem>>, vector<1x128xf32>
    tpu.vector_store %arg6[%c0_30, %c0_31], %181 {strides = array<i32>} : memref<1x128xf32, #tpu.memory_space<vmem>>, vector<1x128xf32>,
    %183 = tpu.concatenate %27, %49, %71, %93, %115, %137, %159, %181 in 0 : vector<1x128xf32>, vector<1x128xf32>, vector<1x128xf32>, vector<1x128xf32>, vector<1x128xf32>, vector<1x128xf32>, vector<1x128xf32>, vector<1x128xf32> -> vector<8x128xf32>
    %c0_32 = arith.constant 0 : index
    %c0_33 = arith.constant 0 : index
    %184 = vector.load %arg5[%c0_32, %c0_33] : memref<8x128xf32, #tpu.memory_space<vmem>>, vector<8x128xf32>
    tpu.vector_store %arg5[%c0_32, %c0_33], %183 {strides = array<i32>} : memref<8x128xf32, #tpu.memory_space<vmem>>, vector<8x128xf32>,
    return
  }
  func.func @transform_0(%arg0: i32) -> (i32, i32) {
    %c0_i32 = arith.constant 0 : i32
    %c0_i32_0 = arith.constant 0 : i32
    return %arg0, %c0_i32 : i32, i32
  }
  func.func @transform_1(%arg0: i32) -> (i32, i32) {
    %c0_i32 = arith.constant 0 : i32
    %c0_i32_0 = arith.constant 0 : i32
    %c0_i32_1 = arith.constant 0 : i32
    return %c0_i32, %c0_i32_0 : i32, i32
  }
  func.func @transform_2(%arg0: i32) -> (i32, i32) {
    %c0_i32 = arith.constant 0 : i32
    %c0_i32_0 = arith.constant 0 : i32
    %c0_i32_1 = arith.constant 0 : i32
    return %c0_i32, %c0_i32_0 : i32, i32
  }
  func.func @transform_3(%arg0: i32) -> (i32, i32) {
    %c0_i32 = arith.constant 0 : i32
    %c0_i32_0 = arith.constant 0 : i32
    %c0_i32_1 = arith.constant 0 : i32
    return %c0_i32, %c0_i32_0 : i32, i32
  }
  func.func @transform_4(%arg0: i32) -> (i32, i32) {
    %c0_i32 = arith.constant 0 : i32
    %c0_i32_0 = arith.constant 0 : i32
    return %arg0, %c0_i32 : i32, i32
  }
}

</mosaic_0001>

<bundles_post_ra>
// kernel: tpu_custom_call.1
= control target key start
LH: loop header
LB: loop body
LE: loop exit
PB: predicated region body
PF: predicated region fallthrough
CT: control target
= control target key end

     0   :  { %9 = vsyncpa [#allocation4], 0  ;;  %s2165_s0 = inlined_call_operand.hbm [shape: f32[8,384], index: 0, kind: input, shape index: {}]   ;;  %s2166_s1 = inlined_call_operand.vmem [shape: f32[1,128], index: 1, kind: input, shape index: {}]   ;;  %s2167_s2 = inlined_call_operand.hbm [shape: bf16[128,384], index: 2, kind: input, shape index: {}]   ;;  %s2168_s3 = inlined_call_operand.vmem [shape: f32[1,384], index: 3, kind: input, shape index: {}]   ;;  %s2169_s4 = inlined_call_operand.hbm [shape: f32[8,128], index: 4, kind: output, shape index: {}]  }
   0x1   :  { %10 = vsyncpa [#allocation7], 0 }
   0x2   :  { %11 = vsyncpa [#allocation5], 0  ;;  %s1691_s15 = smov [#allocation3]   ;;  %s1692_s17 = smov [#allocation6]  }
   0x3   :  { %s18_s16 = sshll.u32 %s1691_s15, 4  ;;  %s29_s18 = sshll.u32 %s1692_s17, 4  ;;  %s19_s16 = int_to_ptr.vmem [resolvable:$true] %s18_s16  ;;  %s30_s18 = int_to_ptr.vmem [resolvable:$true] %s29_s18 }
   0x4   :  { %s1633_s19 = scalar_lea.vmem %s19_s16, 384  ;;  %p1638_p1 = scmp.lt.s32.totalorder %s19_s16, %s19_s16 }
   0x5   :  { %p1634_p0 = scmp.ne.s32.totalorder %s19_s16, %s1633_s19  ;;  %p1639_p2 = scmp.lt.s32.totalorder %s1633_s19, %s1633_s19 }
   0x7   :  { %p1640_p3 = por %p1639_p2, %p1638_p1 }
   0x9   :  { %p1641_p4 = pnand %p1640_p3, %p1634_p0 }
   0xb   :  { %1644 = shalt.err (!%p1641_p4)
}
   0xc   :  { %21 = dma.hbm_to_vmem [thread:$0]  %s2165_s0, 384, %s19_s16, [#allocation4]  }
   0xd   :  { %s1653_s22 = scalar_lea.vmem %s30_s18, 3072  ;;  %p1658_p6 = scmp.lt.s32.totalorder %s30_s18, %s30_s18 }
   0xe   :  { %p1654_p5 = scmp.ne.s32.totalorder %s30_s18, %s1653_s22  ;;  %p1659_p7 = scmp.lt.s32.totalorder %s1653_s22, %s1653_s22 }
  0x10   :  { %p1660_p8 = por %p1659_p7, %p1658_p6 }
  0x12   :  { %p1661_p9 = pnand %p1660_p8, %p1654_p5 }
  0x14   :  { %1664 = shalt.err (!%p1661_p9)
}
  0x15   :  { %s1693_s23 = smov 192   ;;  %s1694_s24 = smov 12  }
  0x16   :  { %35 = dma.hbm_to_vmem [thread:$0]  %s2167_s2, 3072, %s30_s18, [#allocation7], %s1693_s23, %s1693_s23, %s1694_s24  }
  0x17   :  { %1685 = dma.done.wait [#allocation4], 384  }
  0x18   :  { %1686 = vsyncadd [#allocation4], 4294966912 }
  0x19   :  { %1687 = dma.done.wait [#allocation7], 3072  }
  0x1a   :  { %1688 = vsyncadd [#allocation7], 4294964224  ;;  %v1695_v0 = vmov 0   ;;  %v1696_v1 = vmov 0.0   ;;  %vm1697_vm0 = vmmov 0   ;;  %v216_v29 = vlaneseq }
  0x1b   :  { %263 = vmatprep.mubr.bf16.mxu0 %v1695_v0  ;;  %1374 = vmatprep.subr.bf16.mxu1 %v1696_v1  ;;  %v1735_v2 = vld [vmem:[#allocation6 + $0xac] ss:$12 sps:$4 sm:$0xff]   ;;  %v1737_v3 = vld [vmem:[#allocation6 + $0xa8] ss:$12 sps:$4 sm:$0xff]   ;;  %v1743_v5 = vld [vmem:[#allocation6 + $0x90] ss:$12 sps:$4 sm:$0xff]  }
  0x1c   :  { %1390 = vmatprep.mubr.msk.bf16.mxu1 %vm1697_vm0, %v1696_v1  ;;  %231 = vmatprep.subr.bf16.mxu0 %v1735_v2  ;;  %v1740_v4 = vld [vmem:[#allocation6 + $0x94] ss:$12 sps:$4 sm:$0xff]   ;;  %v1746_v6 = vld [vmem:[#allocation6 + $0x7c] ss:$12 sps:$4 sm:$0xff]   ;;  %v1749_v7 = vld [vmem:[#allocation6 + $0x78] ss:$12 sps:$4 sm:$0xff]  }
  0x1d   :  { %232 = vmatpush1.bf16.msra.mxu0 %v1737_v3  ;;  %v1752_v8 = vld [vmem:[#allocation6 + $0x64] ss:$12 sps:$4 sm:$0xff]   ;;  %v1754_v9 = vld [vmem:[#allocation6 + $0x60] ss:$12 sps:$4 sm:$0xff]   ;;  %v1770_v14 = vld [vmem:[#allocation6 + $0x48] ss:$12 sps:$4 sm:$0xff]  }
  0x1e   :  { %233 = vmatprep.subr.bf16.mxu0 %v1740_v4  ;;  %v49_v10 = vld [vmem:[%s2166_s1] sm:$0x1]  ;;  %v1760_v11 = vld [vmem:[#allocation6 + $0xb0] ss:$12 sps:$4 sm:$0xff]   ;;  %v1763_v12 = vld [vmem:[#allocation6 + $0x4c] ss:$12 sps:$4 sm:$0xff]  }
  0x1f   :  { %50 = vst [vmem:[#allocation2] sm:$0x1] %v49_v10  ;;  %1375 = vmatpush3.bf16.msra.mxu1 %v1760_v11  ;;  %v1766_v13 = vld [vmem:[#allocation6 + $0x98] ss:$12 sps:$4 sm:$0xff]   ;;  %v1773_v15 = vld [vmem:[#allocation6 + $0x34] ss:$12 sps:$4 sm:$0xff]  }
  0x20   :  { %1376 = vmatprep.subr.bf16.mxu1 %v1696_v1  ;;  %v1776_v16 = vld [vmem:[#allocation6 + $0x80] ss:$12 sps:$4 sm:$0xff]   ;;  %v1780_v17 = vld [vmem:[#allocation6 + $0x30] ss:$12 sps:$4 sm:$0xff]   ;;  %v1786_v19 = vld [vmem:[#allocation6 + $0x68] ss:$12 sps:$4 sm:$0xff]  }
  0x21   :  { %234 = vmatpush1.bf16.msra.mxu0 %v1743_v5  ;;  %v1783_v18 = vld [vmem:[#allocation6 + $0x1c] ss:$12 sps:$4 sm:$0xff]   ;;  %v1790_v20 = vld [vmem:[#allocation6 + $0x18] ss:$12 sps:$4 sm:$0xff]   ;;  %v1800_v23 = vld [vmem:[#allocation6] ss:$12 sps:$4 sm:$0xff]  }
  0x22   :  { %235 = vmatprep.subr.bf16.mxu0 %v1746_v6  ;;  %v1793_v21 = vld [vmem:[#allocation6 + $0x4] ss:$12 sps:$4 sm:$0xff]   ;;  %v1814_v27 = vld [vmem:[#allocation6 + $0x20] ss:$12 sps:$4 sm:$0xff]   ;;  %v1821_v28 = vld [vmem:[#allocation6 + $0x8] ss:$12 sps:$4 sm:$0xff]  }
  0x23   :  { %1377 = vmatpush3.bf16.msra.mxu1 %v1766_v13  ;;  %v1796_v22 = vld [vmem:[#allocation6 + $0x50] ss:$12 sps:$4 sm:$0xff]   ;;  %v1806_v25 = vld [vmem:[#allocation6 + $0x38] ss:$12 sps:$4 sm:$0xff]   ;;  %v217_v30 = vshrl.u32 %v216_v29, 7  ;;  %vm1239_vm1 = vcmask 1040384  }
  0x24   :  { %1378 = vmatprep.subr.bf16.mxu1 %v1696_v1  ;;  %v1698_v32 = vmov 1966171168   ;;  %v83_v35 = vld [vmem:[%s2168_s3] sm:$0x7]  ;;  %vm1241_vm2 = vcmask 1041408   ;;  %vm1243_vm3 = vcmask 1042432  }
  0x25   :  { %236 = vmatpush1.bf16.msra.mxu0 %v1749_v7  ;;  %v1858_v31 = vsub.s32 0, %v217_v30  ;;  %v316_v33 = vunpack.c.l.s4 %v1698_v32  ;;  %v222_v34 = vsub.s32 1, %v217_v30  ;;  %v85_v48 = vld [vmem:[#allocation3] ss:$8 sm:$0x7]  ;;  %v226_v58 = vsub.s32 2, %v217_v30 }
  0x26   :  { %237 = vmatprep.subr.bf16.mxu0 %v1752_v8  ;;  %v1802_v24 = vld [vmem:[#allocation2] sm:$0x1]  ;;  %v339_v61 = vrot.slane %v85_v48, 2  ;;  %vm1245_vm4 = vcmask 1043456   ;;  %vm1247_vm5 = vcmask 1044480   ;;  %vm1249_vm6 = vcmask 1045504  }
  0x27   :  { %1379 = vmatpush3.bf16.msra.mxu1 %v1776_v16  ;;  %v86_v26 = vpack.c.bf16 %v1802_v24, %v1802_v24  ;;  %v1864_v36 = vrot.slane %v83_v35, %v1858_v31  ;;  %v317_v37 = vunpack.c.0.s8 %v316_v33  ;;  %v1866_v38 = vrot.slane %v83_v35, %v222_v34  ;;  %s1699_s3 = smov [#allocation8]  }
  0x28   :  { %1380 = vmatprep.subr.bf16.mxu1 %v1696_v1  ;;  %v1874_v59 = vrot.slane %v83_v35, %v226_v58  ;;  %s1260_s28 = sshll.u32 %s1699_s3, 4  ;;  %vm1251_vm7 = vcmask 1046528   ;;  %s1261_s28 = int_to_ptr.vmem [resolvable:$true] %s1260_s28 }
  0x29   :  { %238 = vmatpush1.bf16.msra.mxu0 %v1754_v9  ;;  %v1869_v42 = vsub.s32 %v317_v37, %v217_v30  ;;  %s1665_s29 = scalar_lea.vmem %s1261_s28, 128  ;;  %p1670_p11 = scmp.lt.s32.totalorder %s1261_s28, %s1261_s28 }
  0x2a   :  { %239 = vmatprep.subr.bf16.mxu0 %v1763_v12  ;;  %p1666_p10 = scmp.ne.s32.totalorder %s1261_s28, %s1665_s29  ;;  %p1671_p12 = scmp.lt.s32.totalorder %s1665_s29, %s1665_s29 }
  0x2b   :  { %1381 = vmatpush3.bf16.msra.mxu1 %v1786_v19 }
  0x2c   :  { %1382 = vmatprep.subr.bf16.mxu1 %v1696_v1  ;;  %p1672_p13 = por %p1671_p12, %p1670_p11 }
  0x2d   :  { %240 = vmatpush1.bf16.msra.mxu0 %v1770_v14 }
  0x2e   :  { %241 = vmatprep.subr.bf16.mxu0 %v1773_v15  ;;  %p1673_p0 = pnand %p1672_p13, %p1666_p10 }
  0x2f   :  { %1383 = vmatpush3.bf16.msra.mxu1 %v1796_v22 }
  0x30   :  { %1384 = vmatprep.subr.bf16.mxu1 %v1696_v1 }
  0x31   :  { %242 = vmatpush1.bf16.msra.mxu0 %v1780_v17 }
  0x32   :  { %243 = vmatprep.subr.bf16.mxu0 %v1783_v18 }
  0x33   :  { %1385 = vmatpush3.bf16.msra.mxu1 %v1806_v25 }
  0x34   :  { %1386 = vmatprep.subr.bf16.mxu1 %v1696_v1 }
  0x35   :  { %244 = vmatpush1.bf16.msra.mxu0 %v1790_v20 }
  0x36   :  { %245 = vmatprep.subr.bf16.mxu0 %v1793_v21 }
  0x37   :  { %1387 = vmatpush3.bf16.msra.mxu1 %v1814_v27 }
  0x38   :  { %1388 = vmatprep.subr.bf16.mxu1 %v1696_v1 }
  0x39   :  { %246 = vmatpush1.bf16.msra.mxu0 %v1800_v23 }
  0x3a   :  { %352 = vmatprep.subr.bf16.mxu0 %v1735_v2 }
  0x3b   :  { %1389 = vmatpush3.bf16.msra.mxu1 %v1821_v28 }
  0x3c   :  { %264 = vmatmul.mubr.bf16.vlgmr.msra.gmra.mxu0 %v86_v26  ;;  %1394 = vmatprep.subr.bf16.mxu1 %v1696_v1 }
  0x3d   :  { %353 = vmatpush1.bf16.msra.mxu0 %v1737_v3  ;;  %384 = vmatprep.mubr.bf16.mxu0 %v1695_v0 }
  0x3e   :  { %354 = vmatprep.subr.bf16.mxu0 %v1740_v4  ;;  %1391 = vmatmul.mubr.bf16.vlgmr.msra.gmra.mxu1 %v86_v26 }
  0x3f   :  { %1395 = vmatpush3.bf16.msra.mxu1 %v1760_v11  ;;  %1410 = vmatprep.mubr.msk.bf16.mxu1 %vm1697_vm0, %v1696_v1 }
  0x40   :  { %1396 = vmatprep.subr.bf16.mxu1 %v1696_v1 }
  0x41   :  { %355 = vmatpush1.bf16.msra.mxu0 %v1743_v5 }
  0x42   :  { %356 = vmatprep.subr.bf16.mxu0 %v1746_v6 }
  0x43   :  { %1397 = vmatpush3.bf16.msra.mxu1 %v1766_v13 }
  0x44   :  { %1398 = vmatprep.subr.bf16.mxu1 %v1696_v1 }
  0x45   :  { %357 = vmatpush1.bf16.msra.mxu0 %v1749_v7 }
  0x46   :  { %358 = vmatprep.subr.bf16.mxu0 %v1752_v8 }
  0x47   :  { %1399 = vmatpush3.bf16.msra.mxu1 %v1776_v16 }
  0x48   :  { %1400 = vmatprep.subr.bf16.mxu1 %v1696_v1 }
  0x49   :  { %359 = vmatpush1.bf16.msra.mxu0 %v1754_v9 }
  0x4a   :  { %360 = vmatprep.subr.bf16.mxu0 %v1763_v12 }
  0x4b   :  { %1401 = vmatpush3.bf16.msra.mxu1 %v1786_v19 }
  0x4c   :  { %1402 = vmatprep.subr.bf16.mxu1 %v1696_v1 }
  0x4d   :  { %361 = vmatpush1.bf16.msra.mxu0 %v1770_v14 }
  0x4e   :  { %362 = vmatprep.subr.bf16.mxu0 %v1773_v15 }
  0x4f   :  { %1403 = vmatpush3.bf16.msra.mxu1 %v1796_v22 }
  0x50   :  { %1404 = vmatprep.subr.bf16.mxu1 %v1696_v1 }
  0x51   :  { %363 = vmatpush1.bf16.msra.mxu0 %v1780_v17 }
  0x52   :  { %364 = vmatprep.subr.bf16.mxu0 %v1783_v18 }
  0x53   :  { %1405 = vmatpush3.bf16.msra.mxu1 %v1806_v25 }
  0x54   :  { %1406 = vmatprep.subr.bf16.mxu1 %v1696_v1 }
  0x55   :  { %365 = vmatpush1.bf16.msra.mxu0 %v1790_v20 }
  0x56   :  { %366 = vmatprep.subr.bf16.mxu0 %v1793_v21 }
  0x57   :  { %1407 = vmatpush3.bf16.msra.mxu1 %v1814_v27 }
  0x58   :  { %1408 = vmatprep.subr.bf16.mxu1 %v1696_v1 }
  0x59   :  { %367 = vmatpush1.bf16.msra.mxu0 %v1800_v23 }
  0x5a   :  { %473 = vmatprep.subr.bf16.mxu0 %v1735_v2 }
  0x5b   :  { %1409 = vmatpush3.bf16.msra.mxu1 %v1821_v28 }
  0x5c   :  { %1414 = vmatprep.subr.bf16.mxu1 %v1696_v1 }
  0xfc   :  { %v265_v39 = vpop.f32.mrf.mxu0 }
  0xfd   :  { %v266_v41 = vadd.f32 %v265_v39, %v1864_v36 }
  0xfe   :  { %v267_v40 = vpop.f32.mrf.mxu0  ;;  %v306_v50 = vpop.f32.mrf.mxu1 }
  0xff   :  { %v268_v43 = vadd.f32 %v267_v40, %v1866_v38  ;;  %v307_v60 = vadd.f32 %v306_v50, %v1874_v59 }
 0x100   :  { %v269_v44 = vpop.f32.mrf.mxu0  ;;  %v1392_v52 = vpop.f32.mrf.mxu1 }
 0x101   :  { %v314_v45 = vcombine.low %v266_v41, %v268_v43 }
 0x102   :  { %v270_v46 = vpop.f32.mrf.mxu0  ;;  %v309_v54 = vpop.f32.mrf.mxu1 }
 0x103   :  { %v321_v47 = vrot.slane %v314_v45, %v1869_v42 }
 0x104   :  { %v1393_v55 = vpop.f32.mrf.mxu1 }
 0x105   :  { %v328_v49 = vrot.slane %v321_v47, %v1869_v42 }
 0x107   :  { %v330_v51 = vadd.f32 %v328_v49, %v85_v48  ;;  %v350_v49 = vld [vmem:[#allocation3 + $0x1] ss:$8 sm:$0x7] }
 0x109   :  { %v1294_v53 = vmul.f32 -1.442695, %v330_v51 }
 0x10b   :  { %1575 = vpow2.f32 %v1294_v53 }
 0x118   :  { %v1576_v56 = vpop.eup %1575 }
 0x119   :  { %v334_v57 = vadd.f32 1.0, %v1576_v56  ;;  %v460_v56 = vrot.slane %v350_v49, 2 }
 0x11b   :  { %1577 = vrcp.f32 %v334_v57 }
 0x128   :  { %v1578_v62 = vpop.eup %1577 }
 0x129   :  { %v337_v63 = vmul.f32 %v1578_v62, %v307_v60  ;;  %v345_v32 = vrot.slane %v1578_v62, 1 }
 0x12b   :  { %v341_v10 = vadd.f32 %v339_v61, %v337_v63 }
 0x12d   :  { %1579 = vtanh.f32 %v341_v10 }
 0x13a   :  { %v1580_v26 = vpop.eup %1579 }
 0x13b   :  { %v343_v29 = vsub.f32 %v1802_v24, %v1580_v26 }
 0x13d   :  { %v347_v33 = vmul.f32 %v345_v32, %v343_v29 }
 0x13f   :  { %v1878_v34 = vadd.f32 %v1580_v26, %v347_v33 }
 0x141   :  { %v351_v37 = vpack.c.bf16 %v1878_v34, %v1878_v34 }
 0x143   :  { %385 = vmatmul.mubr.bf16.vlgmr.msra.gmra.mxu0 %v351_v37  ;;  %1411 = vmatmul.mubr.bf16.vlgmr.msra.gmra.mxu1 %v351_v37 }
 0x144   :  { %474 = vmatpush1.bf16.msra.mxu0 %v1737_v3  ;;  %1415 = vmatpush3.bf16.msra.mxu1 %v1760_v11 }
 0x145   :  { %475 = vmatprep.subr.bf16.mxu0 %v1740_v4  ;;  %1416 = vmatprep.subr.bf16.mxu1 %v1696_v1 }
 0x146   :  { %505 = vmatprep.mubr.bf16.mxu0 %v1695_v0  ;;  %1430 = vmatprep.mubr.msk.bf16.mxu1 %vm1697_vm0, %v1696_v1 }
 0x148   :  { %476 = vmatpush1.bf16.msra.mxu0 %v1743_v5  ;;  %1417 = vmatpush3.bf16.msra.mxu1 %v1766_v13 }
 0x149   :  { %477 = vmatprep.subr.bf16.mxu0 %v1746_v6  ;;  %1418 = vmatprep.subr.bf16.mxu1 %v1696_v1 }
 0x14c   :  { %478 = vmatpush1.bf16.msra.mxu0 %v1749_v7  ;;  %1419 = vmatpush3.bf16.msra.mxu1 %v1776_v16 }
 0x14d   :  { %479 = vmatprep.subr.bf16.mxu0 %v1752_v8  ;;  %1420 = vmatprep.subr.bf16.mxu1 %v1696_v1 }
 0x150   :  { %480 = vmatpush1.bf16.msra.mxu0 %v1754_v9  ;;  %1421 = vmatpush3.bf16.msra.mxu1 %v1786_v19 }
 0x151   :  { %481 = vmatprep.subr.bf16.mxu0 %v1763_v12  ;;  %1422 = vmatprep.subr.bf16.mxu1 %v1696_v1 }
 0x154   :  { %482 = vmatpush1.bf16.msra.mxu0 %v1770_v14  ;;  %1423 = vmatpush3.bf16.msra.mxu1 %v1796_v22 }
 0x155   :  { %483 = vmatprep.subr.bf16.mxu0 %v1773_v15  ;;  %1424 = vmatprep.subr.bf16.mxu1 %v1696_v1 }
 0x158   :  { %484 = vmatpush1.bf16.msra.mxu0 %v1780_v17  ;;  %1425 = vmatpush3.bf16.msra.mxu1 %v1806_v25 }
 0x159   :  { %485 = vmatprep.subr.bf16.mxu0 %v1783_v18  ;;  %1426 = vmatprep.subr.bf16.mxu1 %v1696_v1 }
 0x15c   :  { %486 = vmatpush1.bf16.msra.mxu0 %v1790_v20  ;;  %1427 = vmatpush3.bf16.msra.mxu1 %v1814_v27 }
 0x15d   :  { %487 = vmatprep.subr.bf16.mxu0 %v1793_v21  ;;  %1428 = vmatprep.subr.bf16.mxu1 %v1696_v1 }
 0x160   :  { %488 = vmatpush1.bf16.msra.mxu0 %v1800_v23  ;;  %1429 = vmatpush3.bf16.msra.mxu1 %v1821_v28 }
 0x161   :  { %594 = vmatprep.subr.bf16.mxu0 %v1735_v2  ;;  %1434 = vmatprep.subr.bf16.mxu1 %v1696_v1 }
 0x203   :  { %v386_v24 = vpop.f32.mrf.mxu0  ;;  %v427_v30 = vpop.f32.mrf.mxu1 }
 0x204   :  { %v387_v40 = vadd.f32 %v386_v24, %v1864_v36  ;;  %v428_v55 = vadd.f32 %v427_v30, %v1874_v59 }
 0x205   :  { %v388_v35 = vpop.f32.mrf.mxu0  ;;  %v1412_v39 = vpop.f32.mrf.mxu1 }
 0x206   :  { %v389_v41 = vadd.f32 %v388_v35, %v1866_v38 }
 0x207   :  { %v390_v43 = vpop.f32.mrf.mxu0  ;;  %v430_v44 = vpop.f32.mrf.mxu1 }
 0x208   :  { %v435_v45 = vcombine.low %v387_v40, %v389_v41 }
 0x209   :  { %v391_v46 = vpop.f32.mrf.mxu0  ;;  %v1413_v47 = vpop.f32.mrf.mxu1 }
 0x20a   :  { %v442_v48 = vrot.slane %v435_v45, %v1869_v42  ;;  %v471_v46 = vld [vmem:[#allocation3 + $0x2] ss:$8 sm:$0x7] }
 0x20c   :  { %v449_v50 = vrot.slane %v442_v48, %v1869_v42 }
 0x20e   :  { %v451_v51 = vadd.f32 %v449_v50, %v350_v49 }
 0x210   :  { %v1295_v52 = vmul.f32 -1.442695, %v451_v51 }
 0x212   :  { %1581 = vpow2.f32 %v1295_v52 }
 0x21f   :  { %v1582_v53 = vpop.eup %1581 }
 0x220   :  { %v455_v54 = vadd.f32 1.0, %v1582_v53  ;;  %v581_v53 = vrot.slane %v471_v46, 2 }
 0x222   :  { %1583 = vrcp.f32 %v455_v54 }
 0x22f   :  { %v1584_v57 = vpop.eup %1583 }
 0x230   :  { %v458_v58 = vmul.f32 %v1584_v57, %v428_v55  ;;  %v466_v63 = vrot.slane %v1584_v57, 1 }
 0x232   :  { %v462_v60 = vadd.f32 %v460_v56, %v458_v58 }
 0x234   :  { %1585 = vtanh.f32 %v462_v60 }
 0x241   :  { %v1586_v61 = vpop.eup %1585 }
 0x242   :  { %v464_v62 = vsub.f32 %v1878_v34, %v1586_v61 }
 0x244   :  { %v468_v10 = vmul.f32 %v466_v63, %v464_v62 }
 0x246   :  { %v1923_v26 = vadd.f32 %v1586_v61, %v468_v10 }
 0x248   :  { %v472_v29 = vpack.c.bf16 %v1923_v26, %v1923_v26 }
 0x24a   :  { %506 = vmatmul.mubr.bf16.vlgmr.msra.gmra.mxu0 %v472_v29  ;;  %1431 = vmatmul.mubr.bf16.vlgmr.msra.gmra.mxu1 %v472_v29 }
 0x24b   :  { %595 = vmatpush1.bf16.msra.mxu0 %v1737_v3  ;;  %1435 = vmatpush3.bf16.msra.mxu1 %v1760_v11 }
 0x24c   :  { %596 = vmatprep.subr.bf16.mxu0 %v1740_v4  ;;  %1436 = vmatprep.subr.bf16.mxu1 %v1696_v1 }
 0x24d   :  { %626 = vmatprep.mubr.bf16.mxu0 %v1695_v0  ;;  %1450 = vmatprep.mubr.msk.bf16.mxu1 %vm1697_vm0, %v1696_v1 }
 0x24f   :  { %597 = vmatpush1.bf16.msra.mxu0 %v1743_v5  ;;  %1437 = vmatpush3.bf16.msra.mxu1 %v1766_v13 }
 0x250   :  { %598 = vmatprep.subr.bf16.mxu0 %v1746_v6  ;;  %1438 = vmatprep.subr.bf16.mxu1 %v1696_v1 }
 0x253   :  { %599 = vmatpush1.bf16.msra.mxu0 %v1749_v7  ;;  %1439 = vmatpush3.bf16.msra.mxu1 %v1776_v16 }
 0x254   :  { %600 = vmatprep.subr.bf16.mxu0 %v1752_v8  ;;  %1440 = vmatprep.subr.bf16.mxu1 %v1696_v1 }
 0x257   :  { %601 = vmatpush1.bf16.msra.mxu0 %v1754_v9  ;;  %1441 = vmatpush3.bf16.msra.mxu1 %v1786_v19 }
 0x258   :  { %602 = vmatprep.subr.bf16.mxu0 %v1763_v12  ;;  %1442 = vmatprep.subr.bf16.mxu1 %v1696_v1 }
 0x25b   :  { %603 = vmatpush1.bf16.msra.mxu0 %v1770_v14  ;;  %1443 = vmatpush3.bf16.msra.mxu1 %v1796_v22 }
 0x25c   :  { %604 = vmatprep.subr.bf16.mxu0 %v1773_v15  ;;  %1444 = vmatprep.subr.bf16.mxu1 %v1696_v1 }
 0x25f   :  { %605 = vmatpush1.bf16.msra.mxu0 %v1780_v17  ;;  %1445 = vmatpush3.bf16.msra.mxu1 %v1806_v25 }
 0x260   :  { %606 = vmatprep.subr.bf16.mxu0 %v1783_v18  ;;  %1446 = vmatprep.subr.bf16.mxu1 %v1696_v1 }
 0x263   :  { %607 = vmatpush1.bf16.msra.mxu0 %v1790_v20  ;;  %1447 = vmatpush3.bf16.msra.mxu1 %v1814_v27 }
 0x264   :  { %608 = vmatprep.subr.bf16.mxu0 %v1793_v21  ;;  %1448 = vmatprep.subr.bf16.mxu1 %v1696_v1 }
 0x267   :  { %609 = vmatpush1.bf16.msra.mxu0 %v1800_v23  ;;  %1449 = vmatpush3.bf16.msra.mxu1 %v1821_v28 }
 0x268   :  { %715 = vmatprep.subr.bf16.mxu0 %v1735_v2  ;;  %1454 = vmatprep.subr.bf16.mxu1 %v1696_v1 }
 0x30a   :  { %v507_v32 = vpop.f32.mrf.mxu0  ;;  %v548_v33 = vpop.f32.mrf.mxu1 }
 0x30b   :  { %v508_v30 = vadd.f32 %v507_v32, %v1864_v36  ;;  %v549_v52 = vadd.f32 %v548_v33, %v1874_v59 }
 0x30c   :  { %v509_v37 = vpop.f32.mrf.mxu0  ;;  %v1432_v24 = vpop.f32.mrf.mxu1 }
 0x30d   :  { %v510_v35 = vadd.f32 %v509_v37, %v1866_v38 }
 0x30e   :  { %v511_v39 = vpop.f32.mrf.mxu0  ;;  %v551_v40 = vpop.f32.mrf.mxu1 }
 0x30f   :  { %v556_v41 = vcombine.low %v508_v30, %v510_v35 }
 0x310   :  { %v512_v43 = vpop.f32.mrf.mxu0  ;;  %v1433_v44 = vpop.f32.mrf.mxu1 }
 0x311   :  { %v563_v45 = vrot.slane %v556_v41, %v1869_v42  ;;  %v592_v44 = vld [vmem:[#allocation3 + $0x3] ss:$8 sm:$0x7] }
 0x313   :  { %v570_v47 = vrot.slane %v563_v45, %v1869_v42 }
 0x315   :  { %v572_v48 = vadd.f32 %v570_v47, %v471_v46 }
 0x317   :  { %v1296_v49 = vmul.f32 -1.442695, %v572_v48 }
 0x319   :  { %1587 = vpow2.f32 %v1296_v49 }
 0x326   :  { %v1588_v50 = vpop.eup %1587 }
 0x327   :  { %v576_v51 = vadd.f32 1.0, %v1588_v50 }
 0x329   :  { %1589 = vrcp.f32 %v576_v51  ;;  %v702_v51 = vrot.slane %v592_v44, 2 }
 0x336   :  { %v1590_v54 = vpop.eup %1589 }
 0x337   :  { %v579_v55 = vmul.f32 %v1590_v54, %v549_v52  ;;  %v587_v60 = vrot.slane %v1590_v54, 1 }
 0x339   :  { %v583_v56 = vadd.f32 %v581_v53, %v579_v55 }
 0x33b   :  { %1591 = vtanh.f32 %v583_v56 }
 0x348   :  { %v1592_v57 = vpop.eup %1591 }
 0x349   :  { %v585_v58 = vsub.f32 %v1923_v26, %v1592_v57 }
 0x34b   :  { %v589_v61 = vmul.f32 %v587_v60, %v585_v58 }
 0x34d   :  { %v1968_v62 = vadd.f32 %v1592_v57, %v589_v61 }
 0x34f   :  { %v593_v63 = vpack.c.bf16 %v1968_v62, %v1968_v62 }
 0x351   :  { %627 = vmatmul.mubr.bf16.vlgmr.msra.gmra.mxu0 %v593_v63  ;;  %1451 = vmatmul.mubr.bf16.vlgmr.msra.gmra.mxu1 %v593_v63 }
 0x352   :  { %716 = vmatpush1.bf16.msra.mxu0 %v1737_v3  ;;  %1455 = vmatpush3.bf16.msra.mxu1 %v1760_v11 }
 0x353   :  { %717 = vmatprep.subr.bf16.mxu0 %v1740_v4  ;;  %1456 = vmatprep.subr.bf16.mxu1 %v1696_v1 }
 0x354   :  { %747 = vmatprep.mubr.bf16.mxu0 %v1695_v0  ;;  %1470 = vmatprep.mubr.msk.bf16.mxu1 %vm1697_vm0, %v1696_v1 }
 0x356   :  { %718 = vmatpush1.bf16.msra.mxu0 %v1743_v5  ;;  %1457 = vmatpush3.bf16.msra.mxu1 %v1766_v13 }
 0x357   :  { %719 = vmatprep.subr.bf16.mxu0 %v1746_v6  ;;  %1458 = vmatprep.subr.bf16.mxu1 %v1696_v1 }
 0x35a   :  { %720 = vmatpush1.bf16.msra.mxu0 %v1749_v7  ;;  %1459 = vmatpush3.bf16.msra.mxu1 %v1776_v16 }
 0x35b   :  { %721 = vmatprep.subr.bf16.mxu0 %v1752_v8  ;;  %1460 = vmatprep.subr.bf16.mxu1 %v1696_v1 }
 0x35e   :  { %722 = vmatpush1.bf16.msra.mxu0 %v1754_v9  ;;  %1461 = vmatpush3.bf16.msra.mxu1 %v1786_v19 }
 0x35f   :  { %723 = vmatprep.subr.bf16.mxu0 %v1763_v12  ;;  %1462 = vmatprep.subr.bf16.mxu1 %v1696_v1 }
 0x362   :  { %724 = vmatpush1.bf16.msra.mxu0 %v1770_v14  ;;  %1463 = vmatpush3.bf16.msra.mxu1 %v1796_v22 }
 0x363   :  { %725 = vmatprep.subr.bf16.mxu0 %v1773_v15  ;;  %1464 = vmatprep.subr.bf16.mxu1 %v1696_v1 }
 0x366   :  { %726 = vmatpush1.bf16.msra.mxu0 %v1780_v17  ;;  %1465 = vmatpush3.bf16.msra.mxu1 %v1806_v25 }
 0x367   :  { %727 = vmatprep.subr.bf16.mxu0 %v1783_v18  ;;  %1466 = vmatprep.subr.bf16.mxu1 %v1696_v1 }
 0x36a   :  { %728 = vmatpush1.bf16.msra.mxu0 %v1790_v20  ;;  %1467 = vmatpush3.bf16.msra.mxu1 %v1814_v27 }
 0x36b   :  { %729 = vmatprep.subr.bf16.mxu0 %v1793_v21  ;;  %1468 = vmatprep.subr.bf16.mxu1 %v1696_v1 }
 0x36e   :  { %730 = vmatpush1.bf16.msra.mxu0 %v1800_v23  ;;  %1469 = vmatpush3.bf16.msra.mxu1 %v1821_v28 }
 0x36f   :  { %836 = vmatprep.subr.bf16.mxu0 %v1735_v2  ;;  %1474 = vmatprep.subr.bf16.mxu1 %v1696_v1 }
 0x411   :  { %v628_v10 = vpop.f32.mrf.mxu0  ;;  %v669_v29 = vpop.f32.mrf.mxu1 }
 0x412   :  { %v629_v37 = vadd.f32 %v628_v10, %v1864_v36  ;;  %v670_v50 = vadd.f32 %v669_v29, %v1874_v59 }
 0x413   :  { %v630_v32 = vpop.f32.mrf.mxu0  ;;  %v1452_v33 = vpop.f32.mrf.mxu1 }
 0x414   :  { %v631_v24 = vadd.f32 %v630_v32, %v1866_v38 }
 0x415   :  { %v632_v30 = vpop.f32.mrf.mxu0  ;;  %v672_v35 = vpop.f32.mrf.mxu1 }
 0x416   :  { %v677_v39 = vcombine.low %v629_v37, %v631_v24 }
 0x417   :  { %v633_v40 = vpop.f32.mrf.mxu0  ;;  %v1453_v41 = vpop.f32.mrf.mxu1 }
 0x418   :  { %v684_v43 = vrot.slane %v677_v39, %v1869_v42 }
 0x41a   :  { %v691_v45 = vrot.slane %v684_v43, %v1869_v42  ;;  %v713_v43 = vld [vmem:[#allocation3 + $0x4] ss:$8 sm:$0x7] }
 0x41c   :  { %v693_v46 = vadd.f32 %v691_v45, %v592_v44 }
 0x41e   :  { %v1297_v47 = vmul.f32 -1.442695, %v693_v46 }
 0x420   :  { %1593 = vpow2.f32 %v1297_v47 }
 0x42d   :  { %v1594_v48 = vpop.eup %1593 }
 0x42e   :  { %v697_v49 = vadd.f32 1.0, %v1594_v48 }
 0x430   :  { %1595 = vrcp.f32 %v697_v49 }
 0x43d   :  { %v1596_v52 = vpop.eup %1595 }
 0x43e   :  { %v700_v53 = vmul.f32 %v1596_v52, %v670_v50  ;;  %v708_v57 = vrot.slane %v1596_v52, 1  ;;  %v823_v50 = vrot.slane %v713_v43, 2 }
 0x440   :  { %v704_v54 = vadd.f32 %v702_v51, %v700_v53 }
 0x442   :  { %1597 = vtanh.f32 %v704_v54 }
 0x44f   :  { %v1598_v55 = vpop.eup %1597 }
 0x450   :  { %v706_v56 = vsub.f32 %v1968_v62, %v1598_v55 }
 0x452   :  { %v710_v58 = vmul.f32 %v708_v57, %v706_v56 }
 0x454   :  { %v2013_v60 = vadd.f32 %v1598_v55, %v710_v58 }
 0x456   :  { %v714_v61 = vpack.c.bf16 %v2013_v60, %v2013_v60 }
 0x458   :  { %748 = vmatmul.mubr.bf16.vlgmr.msra.gmra.mxu0 %v714_v61  ;;  %1471 = vmatmul.mubr.bf16.vlgmr.msra.gmra.mxu1 %v714_v61 }
 0x459   :  { %837 = vmatpush1.bf16.msra.mxu0 %v1737_v3  ;;  %1475 = vmatpush3.bf16.msra.mxu1 %v1760_v11 }
 0x45a   :  { %838 = vmatprep.subr.bf16.mxu0 %v1740_v4  ;;  %1476 = vmatprep.subr.bf16.mxu1 %v1696_v1 }
 0x45b   :  { %868 = vmatprep.mubr.bf16.mxu0 %v1695_v0  ;;  %1490 = vmatprep.mubr.msk.bf16.mxu1 %vm1697_vm0, %v1696_v1 }
 0x45d   :  { %839 = vmatpush1.bf16.msra.mxu0 %v1743_v5  ;;  %1477 = vmatpush3.bf16.msra.mxu1 %v1766_v13 }
 0x45e   :  { %840 = vmatprep.subr.bf16.mxu0 %v1746_v6  ;;  %1478 = vmatprep.subr.bf16.mxu1 %v1696_v1 }
 0x461   :  { %841 = vmatpush1.bf16.msra.mxu0 %v1749_v7  ;;  %1479 = vmatpush3.bf16.msra.mxu1 %v1776_v16 }
 0x462   :  { %842 = vmatprep.subr.bf16.mxu0 %v1752_v8  ;;  %1480 = vmatprep.subr.bf16.mxu1 %v1696_v1 }
 0x465   :  { %843 = vmatpush1.bf16.msra.mxu0 %v1754_v9  ;;  %1481 = vmatpush3.bf16.msra.mxu1 %v1786_v19 }
 0x466   :  { %844 = vmatprep.subr.bf16.mxu0 %v1763_v12  ;;  %1482 = vmatprep.subr.bf16.mxu1 %v1696_v1 }
 0x469   :  { %845 = vmatpush1.bf16.msra.mxu0 %v1770_v14  ;;  %1483 = vmatpush3.bf16.msra.mxu1 %v1796_v22 }
 0x46a   :  { %846 = vmatprep.subr.bf16.mxu0 %v1773_v15  ;;  %1484 = vmatprep.subr.bf16.mxu1 %v1696_v1 }
 0x46d   :  { %847 = vmatpush1.bf16.msra.mxu0 %v1780_v17  ;;  %1485 = vmatpush3.bf16.msra.mxu1 %v1806_v25 }
 0x46e   :  { %848 = vmatprep.subr.bf16.mxu0 %v1783_v18  ;;  %1486 = vmatprep.subr.bf16.mxu1 %v1696_v1 }
 0x471   :  { %849 = vmatpush1.bf16.msra.mxu0 %v1790_v20  ;;  %1487 = vmatpush3.bf16.msra.mxu1 %v1814_v27 }
 0x472   :  { %850 = vmatprep.subr.bf16.mxu0 %v1793_v21  ;;  %1488 = vmatprep.subr.bf16.mxu1 %v1696_v1 }
 0x475   :  { %851 = vmatpush1.bf16.msra.mxu0 %v1800_v23  ;;  %1489 = vmatpush3.bf16.msra.mxu1 %v1821_v28 }
 0x476   :  { %957 = vmatprep.subr.bf16.mxu0 %v1735_v2  ;;  %1494 = vmatprep.subr.bf16.mxu1 %v1696_v1 }
 0x518   :  { %v749_v63 = vpop.f32.mrf.mxu0  ;;  %v790_v10 = vpop.f32.mrf.mxu1 }
 0x519   :  { %v750_v33 = vadd.f32 %v749_v63, %v1864_v36  ;;  %v791_v49 = vadd.f32 %v790_v10, %v1874_v59 }
 0x51a   :  { %v751_v29 = vpop.f32.mrf.mxu0  ;;  %v1472_v32 = vpop.f32.mrf.mxu1 }
 0x51b   :  { %v752_v37 = vadd.f32 %v751_v29, %v1866_v38 }
 0x51c   :  { %v753_v24 = vpop.f32.mrf.mxu0  ;;  %v793_v30 = vpop.f32.mrf.mxu1 }
 0x51d   :  { %v798_v35 = vcombine.low %v750_v33, %v752_v37 }
 0x51e   :  { %v754_v39 = vpop.f32.mrf.mxu0  ;;  %v1473_v40 = vpop.f32.mrf.mxu1 }
 0x51f   :  { %v805_v41 = vrot.slane %v798_v35, %v1869_v42  ;;  %v834_v40 = vld [vmem:[#allocation3 + $0x5] ss:$8 sm:$0x7] }
 0x521   :  { %v812_v44 = vrot.slane %v805_v41, %v1869_v42 }
 0x523   :  { %v814_v45 = vadd.f32 %v812_v44, %v713_v43 }
 0x525   :  { %v1298_v46 = vmul.f32 -1.442695, %v814_v45 }
 0x527   :  { %1599 = vpow2.f32 %v1298_v46 }
 0x534   :  { %v1600_v47 = vpop.eup %1599 }
 0x535   :  { %v818_v48 = vadd.f32 1.0, %v1600_v47  ;;  %v944_v47 = vrot.slane %v834_v40, 2 }
 0x537   :  { %1601 = vrcp.f32 %v818_v48 }
 0x544   :  { %v1602_v51 = vpop.eup %1601 }
 0x545   :  { %v821_v52 = vmul.f32 %v1602_v51, %v791_v49  ;;  %v829_v56 = vrot.slane %v1602_v51, 1 }
 0x547   :  { %v825_v53 = vadd.f32 %v823_v50, %v821_v52 }
 0x549   :  { %1603 = vtanh.f32 %v825_v53 }
 0x556   :  { %v1604_v54 = vpop.eup %1603 }
 0x557   :  { %v827_v55 = vsub.f32 %v2013_v60, %v1604_v54 }
 0x559   :  { %v831_v57 = vmul.f32 %v829_v56, %v827_v55 }
 0x55b   :  { %v2058_v58 = vadd.f32 %v1604_v54, %v831_v57  ;;  %v1623_v57 = vld [vmem:[#allocation6 + $0xa8] ss:$12 sps:$4 sm:$0xff]  }
 0x55d   :  { %v835_v61 = vpack.c.bf16 %v2058_v58, %v2058_v58 }
 0x55f   :  { %869 = vmatmul.mubr.bf16.vlgmr.msra.gmra.mxu0 %v835_v61  ;;  %1491 = vmatmul.mubr.bf16.vlgmr.msra.gmra.mxu1 %v835_v61  ;;  %v1624_v61 = vld [vmem:[#allocation6 + $0x90] ss:$12 sps:$4 sm:$0xff]  }
 0x560   :  { %958 = vmatpush1.bf16.msra.mxu0 %v1737_v3  ;;  %1495 = vmatpush3.bf16.msra.mxu1 %v1760_v11 }
 0x561   :  { %959 = vmatprep.subr.bf16.mxu0 %v1740_v4  ;;  %1496 = vmatprep.subr.bf16.mxu1 %v1696_v1 }
 0x562   :  { %989 = vmatprep.mubr.bf16.mxu0 %v1695_v0  ;;  %1510 = vmatprep.mubr.msk.bf16.mxu1 %vm1697_vm0, %v1696_v1 }
 0x564   :  { %960 = vmatpush1.bf16.msra.mxu0 %v1743_v5  ;;  %1497 = vmatpush3.bf16.msra.mxu1 %v1766_v13 }
 0x565   :  { %961 = vmatprep.subr.bf16.mxu0 %v1746_v6  ;;  %1498 = vmatprep.subr.bf16.mxu1 %v1696_v1 }
 0x568   :  { %962 = vmatpush1.bf16.msra.mxu0 %v1749_v7  ;;  %1499 = vmatpush3.bf16.msra.mxu1 %v1776_v16 }
 0x569   :  { %963 = vmatprep.subr.bf16.mxu0 %v1752_v8  ;;  %1500 = vmatprep.subr.bf16.mxu1 %v1696_v1 }
 0x56c   :  { %964 = vmatpush1.bf16.msra.mxu0 %v1754_v9  ;;  %1501 = vmatpush3.bf16.msra.mxu1 %v1786_v19 }
 0x56d   :  { %965 = vmatprep.subr.bf16.mxu0 %v1763_v12  ;;  %1502 = vmatprep.subr.bf16.mxu1 %v1696_v1 }
 0x570   :  { %966 = vmatpush1.bf16.msra.mxu0 %v1770_v14  ;;  %1503 = vmatpush3.bf16.msra.mxu1 %v1796_v22 }
 0x571   :  { %967 = vmatprep.subr.bf16.mxu0 %v1773_v15  ;;  %1504 = vmatprep.subr.bf16.mxu1 %v1696_v1 }
 0x574   :  { %968 = vmatpush1.bf16.msra.mxu0 %v1780_v17  ;;  %1505 = vmatpush3.bf16.msra.mxu1 %v1806_v25 }
 0x575   :  { %969 = vmatprep.subr.bf16.mxu0 %v1783_v18  ;;  %1506 = vmatprep.subr.bf16.mxu1 %v1696_v1 }
 0x578   :  { %970 = vmatpush1.bf16.msra.mxu0 %v1790_v20  ;;  %1507 = vmatpush3.bf16.msra.mxu1 %v1814_v27 }
 0x579   :  { %971 = vmatprep.subr.bf16.mxu0 %v1793_v21  ;;  %1508 = vmatprep.subr.bf16.mxu1 %v1696_v1 }
 0x57c   :  { %972 = vmatpush1.bf16.msra.mxu0 %v1800_v23  ;;  %1509 = vmatpush3.bf16.msra.mxu1 %v1821_v28 }
 0x57d   :  { %1078 = vmatprep.subr.bf16.mxu0 %v1735_v2  ;;  %1514 = vmatprep.subr.bf16.mxu1 %v1696_v1 }
 0x61f   :  { %v870_v3 = vpop.f32.mrf.mxu0  ;;  %v911_v5 = vpop.f32.mrf.mxu1 }
 0x620   :  { %v871_v29 = vadd.f32 %v870_v3, %v1864_v36  ;;  %v912_v46 = vadd.f32 %v911_v5, %v1874_v59 }
 0x621   :  { %v872_v63 = vpop.f32.mrf.mxu0  ;;  %v1492_v10 = vpop.f32.mrf.mxu1 }
 0x622   :  { %v873_v32 = vadd.f32 %v872_v63, %v1866_v38 }
 0x623   :  { %v874_v33 = vpop.f32.mrf.mxu0  ;;  %v914_v37 = vpop.f32.mrf.mxu1 }
 0x624   :  { %v919_v24 = vcombine.low %v871_v29, %v873_v32 }
 0x625   :  { %v875_v30 = vpop.f32.mrf.mxu0  ;;  %v1493_v35 = vpop.f32.mrf.mxu1 }
 0x626   :  { %v926_v39 = vrot.slane %v919_v24, %v1869_v42 }
 0x628   :  { %v933_v2 = vrot.slane %v926_v39, %v1869_v42 }
 0x62a   :  { %v935_v41 = vadd.f32 %v933_v2, %v834_v40 }
 0x62c   :  { %v1299_v43 = vmul.f32 -1.442695, %v935_v41 }
 0x62e   :  { %1605 = vpow2.f32 %v1299_v43 }
 0x63b   :  { %v1606_v44 = vpop.eup %1605 }
 0x63c   :  { %v939_v45 = vadd.f32 1.0, %v1606_v44 }
 0x63e   :  { %1607 = vrcp.f32 %v939_v45 }
 0x64b   :  { %v1608_v48 = vpop.eup %1607 }
 0x64c   :  { %v942_v49 = vmul.f32 %v1608_v48, %v912_v46  ;;  %v950_v53 = vrot.slane %v1608_v48, 1  ;;  %v1076_v46 = vld [vmem:[#allocation3 + $0x7] ss:$8 sm:$0x7] }
 0x64e   :  { %v946_v50 = vadd.f32 %v944_v47, %v942_v49 }
 0x650   :  { %1609 = vtanh.f32 %v946_v50 }
 0x65d   :  { %v1610_v51 = vpop.eup %1609 }
 0x65e   :  { %v948_v52 = vsub.f32 %v2058_v58, %v1610_v51 }
 0x660   :  { %v952_v54 = vmul.f32 %v950_v53, %v948_v52  ;;  %v1186_v52 = vrot.slane %v1076_v46, 2 }
 0x662   :  { %v2103_v55 = vadd.f32 %v1610_v51, %v952_v54 }
 0x664   :  { %v956_v56 = vpack.c.bf16 %v2103_v55, %v2103_v55 }
 0x666   :  { %990 = vmatmul.mubr.bf16.vlgmr.msra.gmra.mxu0 %v956_v56  ;;  %1511 = vmatmul.mubr.bf16.vlgmr.msra.gmra.mxu1 %v956_v56  ;;  %v1201_v56 = vrot.slane %v1923_v26, %v1858_v31 }
 0x667   :  { %1079 = vmatpush1.bf16.msra.mxu0 %v1623_v57  ;;  %1515 = vmatpush3.bf16.msra.mxu1 %v1760_v11 }
 0x668   :  { %1080 = vmatprep.subr.bf16.mxu0 %v1740_v4  ;;  %1516 = vmatprep.subr.bf16.mxu1 %v1696_v1  ;;  %v1240_v26 = vsel %vm1239_vm1, %v1878_v34, %v1201_v56 }
 0x669   :  { %1110 = vmatprep.mubr.bf16.mxu0 %v1695_v0  ;;  %1530 = vmatprep.mubr.msk.bf16.mxu1 %vm1697_vm0, %v1696_v1 }
 0x66b   :  { %1081 = vmatpush1.bf16.msra.mxu0 %v1624_v61  ;;  %1517 = vmatpush3.bf16.msra.mxu1 %v1766_v13 }
 0x66c   :  { %1082 = vmatprep.subr.bf16.mxu0 %v1746_v6  ;;  %1518 = vmatprep.subr.bf16.mxu1 %v1696_v1 }
 0x66f   :  { %1083 = vmatpush1.bf16.msra.mxu0 %v1749_v7  ;;  %1519 = vmatpush3.bf16.msra.mxu1 %v1776_v16 }
 0x670   :  { %1084 = vmatprep.subr.bf16.mxu0 %v1752_v8  ;;  %1520 = vmatprep.subr.bf16.mxu1 %v1696_v1 }
 0x673   :  { %1085 = vmatpush1.bf16.msra.mxu0 %v1754_v9  ;;  %1521 = vmatpush3.bf16.msra.mxu1 %v1786_v19 }
 0x674   :  { %1086 = vmatprep.subr.bf16.mxu0 %v1763_v12  ;;  %1522 = vmatprep.subr.bf16.mxu1 %v1696_v1 }
 0x677   :  { %1087 = vmatpush1.bf16.msra.mxu0 %v1770_v14  ;;  %1523 = vmatpush3.bf16.msra.mxu1 %v1796_v22 }
 0x678   :  { %1088 = vmatprep.subr.bf16.mxu0 %v1773_v15  ;;  %1524 = vmatprep.subr.bf16.mxu1 %v1696_v1 }
 0x67b   :  { %1089 = vmatpush1.bf16.msra.mxu0 %v1780_v17  ;;  %1525 = vmatpush3.bf16.msra.mxu1 %v1806_v25 }
 0x67c   :  { %1090 = vmatprep.subr.bf16.mxu0 %v1783_v18  ;;  %1526 = vmatprep.subr.bf16.mxu1 %v1696_v1 }
 0x67f   :  { %1091 = vmatpush1.bf16.msra.mxu0 %v1790_v20  ;;  %1527 = vmatpush3.bf16.msra.mxu1 %v1814_v27 }
 0x680   :  { %1092 = vmatprep.subr.bf16.mxu0 %v1793_v21  ;;  %1528 = vmatprep.subr.bf16.mxu1 %v1696_v1  ;;  %v955_v1 = vld [vmem:[#allocation3 + $0x6] ss:$8 sm:$0x7] }
 0x683   :  { %1093 = vmatpush1.bf16.msra.mxu0 %v1800_v23  ;;  %1529 = vmatpush3.bf16.msra.mxu1 %v1821_v28  ;;  %v1065_v23 = vrot.slane %v955_v1, 2 }
 0x726   :  { %v991_v0 = vpop.f32.mrf.mxu0  ;;  %v1032_v4 = vpop.f32.mrf.mxu1 }
 0x727   :  { %v992_v8 = vadd.f32 %v991_v0, %v1864_v36  ;;  %v1033_v22 = vadd.f32 %v1032_v4, %v1874_v59  ;;  %v1213_v4 = vrot.slane %v2013_v60, %v1858_v31 }
 0x728   :  { %v993_v6 = vpop.f32.mrf.mxu0  ;;  %v1512_v7 = vpop.f32.mrf.mxu1 }
 0x729   :  { %v994_v9 = vadd.f32 %v993_v6, %v1866_v38  ;;  %v1225_v7 = vrot.slane %v2103_v55, %v1858_v31 }
 0x72a   :  { %v995_v11 = vpop.f32.mrf.mxu0  ;;  %v1035_v12 = vpop.f32.mrf.mxu1 }
 0x72b   :  { %v1040_v13 = vcombine.low %v992_v8, %v994_v9 }
 0x72c   :  { %v996_v14 = vpop.f32.mrf.mxu0  ;;  %v1513_v15 = vpop.f32.mrf.mxu1 }
 0x72d   :  { %v1047_v16 = vrot.slane %v1040_v13, %v1869_v42 }
 0x72f   :  { %v1054_v17 = vrot.slane %v1047_v16, %v1869_v42 }
 0x731   :  { %v1056_v18 = vadd.f32 %v1054_v17, %v955_v1 }
 0x733   :  { %v1300_v19 = vmul.f32 -1.442695, %v1056_v18 }
 0x735   :  { %1611 = vpow2.f32 %v1300_v19 }
 0x742   :  { %v1612_v20 = vpop.eup %1611 }
 0x743   :  { %v1060_v21 = vadd.f32 1.0, %v1612_v20 }
 0x745   :  { %1613 = vrcp.f32 %v1060_v21 }
 0x752   :  { %v1614_v25 = vpop.eup %1613 }
 0x753   :  { %v1063_v27 = vmul.f32 %v1614_v25, %v1033_v22  ;;  %v1071_v63 = vrot.slane %v1614_v25, 1 }
 0x755   :  { %v1067_v28 = vadd.f32 %v1065_v23, %v1063_v27 }
 0x757   :  { %1615 = vtanh.f32 %v1067_v28 }
 0x764   :  { %v1616_v3 = vpop.eup %1615 }
 0x765   :  { %v1069_v5 = vsub.f32 %v2103_v55, %v1616_v3 }
 0x767   :  { %v1073_v10 = vmul.f32 %v1071_v63, %v1069_v5 }
 0x769   :  { %v1074_v29 = vadd.f32 %v1616_v3, %v1073_v10 }
 0x76b   :  { %v1077_v32 = vpack.c.bf16 %v1074_v29, %v1074_v29 }
 0x76d   :  { %1111 = vmatmul.mubr.bf16.vlgmr.msra.gmra.mxu0 %v1077_v32  ;;  %1531 = vmatmul.mubr.bf16.vlgmr.msra.gmra.mxu1 %v1077_v32 }
 0x82d   :  { %v1112_v33 = vpop.f32.mrf.mxu0  ;;  %v1153_v37 = vpop.f32.mrf.mxu1 }
 0x82e   :  { %v1113_v35 = vadd.f32 %v1112_v33, %v1864_v36  ;;  %v1154_v36 = vadd.f32 %v1153_v37, %v1874_v59  ;;  %v1219_v59 = vrot.slane %v2058_v58, %v1858_v31 }
 0x82f   :  { %v1114_v24 = vpop.f32.mrf.mxu0  ;;  %v1532_v30 = vpop.f32.mrf.mxu1 }
 0x830   :  { %v1115_v39 = vadd.f32 %v1114_v24, %v1866_v38 }
 0x831   :  { %v1116_v40 = vpop.f32.mrf.mxu0  ;;  %v1156_v2 = vpop.f32.mrf.mxu1 }
 0x832   :  { %v1161_v41 = vcombine.low %v1113_v35, %v1115_v39 }
 0x833   :  { %v1117_v43 = vpop.f32.mrf.mxu0  ;;  %v1533_v44 = vpop.f32.mrf.mxu1 }
 0x834   :  { %v1168_v45 = vrot.slane %v1161_v41, %v1869_v42 }
 0x836   :  { %v1175_v47 = vrot.slane %v1168_v45, %v1869_v42  ;;  %v1207_v42 = vrot.slane %v1968_v62, %v1858_v31  ;;  %v1231_v62 = vrot.slane %v1074_v29, %v1858_v31 }
 0x838   :  { %v1177_v48 = vadd.f32 %v1175_v47, %v1076_v46  ;;  %v1242_v8 = vsel %vm1241_vm2, %v1240_v26, %v1207_v42 }
 0x839   :  { %v1244_v11 = vsel %vm1243_vm3, %v1242_v8, %v1213_v4 }
 0x83a   :  { %v1301_v49 = vmul.f32 -1.442695, %v1177_v48  ;;  %v1246_v60 = vsel %vm1245_vm4, %v1244_v11, %v1219_v59 }
 0x83b   :  { %v1248_v12 = vsel %vm1247_vm5, %v1246_v60, %v1225_v7 }
 0x83c   :  { %1617 = vpow2.f32 %v1301_v49  ;;  %v1250_v13 = vsel %vm1249_vm6, %v1248_v12, %v1231_v62 }
 0x849   :  { %v1618_v50 = vpop.eup %1617 }
 0x84a   :  { %v1181_v51 = vadd.f32 1.0, %v1618_v50 }
 0x84c   :  { %1619 = vrcp.f32 %v1181_v51 }
 0x859   :  { %v1620_v38 = vpop.eup %1619 }
 0x85a   :  { %v1184_v53 = vmul.f32 %v1620_v38, %v1154_v36  ;;  %v1192_v0 = vrot.slane %v1620_v38, 1 }
 0x85c   :  { %v1188_v54 = vadd.f32 %v1186_v52, %v1184_v53 }
 0x85e   :  { %1621 = vtanh.f32 %v1188_v54 }
 0x86b   :  { %v1622_v57 = vpop.eup %1621 }
 0x86c   :  { %v1190_v61 = vsub.f32 %v1074_v29, %v1622_v57 }
 0x86e   :  { %v1194_v6 = vmul.f32 %v1192_v0, %v1190_v61 }
 0x870   :  { %v1195_v9 = vadd.f32 %v1622_v57, %v1194_v6 }
 0x872   :  { %1196 = vst [vmem:[#allocation2] sm:$0x1] %v1195_v9  ;;  %v1237_v58 = vrot.slane %v1195_v9, %v1858_v31 }
 0x874   :  { %v1252_v55 = vsel %vm1251_vm7, %v1250_v13, %v1237_v58 }
 0x875   :  { %1253 = vst [vmem:[#allocation8] sm:$0xff] %v1252_v55 }
 0x876   :  { %1676 = shalt.err (!%p1673_p0)
}
 0x877   :  { %1263 = dma.vmem_to_hbm [thread:$0]  %s1261_s28, 128, %s2169_s4, [#allocation5]  }
 0x878   :  { %1689 = dma.done.wait [#allocation5], 128  }
 0x879   :  { %1690 = vsyncadd [#allocation5], 4294967168 }
 0x87a   :  { %1267 = vsyncpa [#allocation4], 1 }
 0x87b   :  { %1268 = vsyncpa [#allocation7], 1 }
 0x87c   :  { %1269 = vsyncpa [#allocation5], 1 }

</bundles_post_ra>
